<compile_context>
chip_gen: v7x
topology: tpu7x:2x2x1
jax: 0.10.0
libtpu: 0.0.40
codegen_flags: <defaults>
</compile_context>

<pallas_src>
import jax
import jax.numpy as jnp
from jax.experimental import pallas as pl
from jax.experimental.pallas import tpu as pltpu


def embed_classifier_kernel(tok_ref, len_ref, emb_ref, w_ref, b_ref, out_ref):
    TB, L = tok_ref.shape          # batch tile, max sentence length
    V, D = emb_ref.shape           # vocab size, embedding dim

    # --- token counts via 3-D one-hot + sublane reduce (no reshape, no pool matmul) ---
    tok = tok_ref[...]                                                   # (TB, L) int32
    vocab_iota = jax.lax.broadcasted_iota(jnp.int32, (TB, L, V), 2)      # V on lanes
    onehot = (tok[:, :, None] == vocab_iota).astype(jnp.float32)         # (TB, L, V)
    counts = jnp.sum(onehot, axis=1)                                     # (TB, V)

    # --- fold Linear into the embedding table: ew = E @ w  (V, 1), tiny MXU GEMV ---
    ew = jnp.dot(emb_ref[...], w_ref[...], preferred_element_type=jnp.float32)  # (V, 1)

    # --- logits = (counts @ ew) / len + b ; division applied to (TB,1), EUP reciprocal ---
    dotted = jnp.dot(counts, ew, preferred_element_type=jnp.float32)     # (TB, 1)
    inv_len = pl.reciprocal(len_ref[...], approx=True)                   # (TB, 1)
    logits = dotted * inv_len + b_ref[0, 0]                              # bias from SMEM
    out_ref[...] = jax.nn.sigmoid(logits)                                # (TB, 1)


def embed_classifier_forward(tokens, lengths, emb_table, lin_w, lin_b, *, batch_tile=8):
    """tokens: (B, L) int32 (0-padded), lengths: (B,) float32, emb_table: (V, D),
    lin_w: (D, 1), lin_b: scalar -> (B, 1) float32 probabilities."""
    B, L = tokens.shape
    V, D = emb_table.shape
    TB = min(batch_tile, B)
    assert B % TB == 0, "batch must be a multiple of the batch tile"
    grid = (B // TB,)

    return pl.pallas_call(
        embed_classifier_kernel,
        out_shape=jax.ShapeDtypeStruct((B, 1), jnp.float32),
        grid_spec=pltpu.PrefetchScalarGridSpec(
            num_scalar_prefetch=0,
            grid=grid,
            in_specs=[
                pl.BlockSpec((TB, L), lambda i: (i, 0)),                   # tokens (batch-tiled)
                pl.BlockSpec((TB, 1), lambda i: (i, 0)),                   # lengths (batch-tiled)
                pl.BlockSpec((V, D), lambda i: (0, 0)),                    # embedding table (resident)
                pl.BlockSpec((D, 1), lambda i: (0, 0)),                    # linear weight (resident)
                pl.BlockSpec(memory_space=pltpu.MemorySpace.SMEM),         # bias scalar in SMEM
            ],
            out_specs=pl.BlockSpec((TB, 1), lambda i: (i, 0)),
        ),
        compiler_params=pltpu.CompilerParams(
            dimension_semantics=("parallel",),   # batch tiles are independent (megacore on v7x)
        ),
    )(
        tokens.astype(jnp.int32),
        lengths.astype(jnp.float32).reshape(B, 1),
        emb_table.astype(jnp.float32),
        lin_w.astype(jnp.float32),
        lin_b.astype(jnp.float32).reshape(1, 1),
    )


if __name__ == "__main__":
    # Small configuration consistent with the module: embedding dim D = 100 (fixed by
    # the module), vocab V = 32, batch B = 16, max_len L = 16, batch tile TB = 8
    # (grid of 2 steps to exercise the parallel batch axis).
    V, D = 32, 100
    B, L = 16, 16
    TB = 8

    key = jax.random.PRNGKey(0)
    k_emb, k_w, k_b, k_tok, k_len = jax.random.split(key, 5)

    # nn.Embedding default init: N(0, 1); nn.Linear default: U(-1/sqrt(D), 1/sqrt(D)).
    emb_table = jax.random.normal(k_emb, (V, D), dtype=jnp.float32)
    bound = 1.0 / jnp.sqrt(jnp.float32(D))
    lin_w = jax.random.uniform(k_w, (D, 1), minval=-bound, maxval=bound, dtype=jnp.float32)
    lin_b = jax.random.uniform(k_b, (), minval=-bound, maxval=bound, dtype=jnp.float32)

    # Padded token batch exactly like format_input: pad with 0, keep true lengths >= 1.
    lengths_i = jax.random.randint(k_len, (B,), minval=1, maxval=L + 1)
    raw = jax.random.randint(k_tok, (B, L), minval=1, maxval=V, dtype=jnp.int32)
    pos = jnp.arange(L)[None, :]
    tokens = jnp.where(pos < lengths_i[:, None], raw, 0).astype(jnp.int32)
    lengths = lengths_i.astype(jnp.float32)

    out = embed_classifier_forward(tokens, lengths, emb_table, lin_w, lin_b, batch_tile=TB)
    out = jax.block_until_ready(out)

    # Plain-JAX reference mirroring the PyTorch forward semantics exactly.
    emb = emb_table[tokens]                              # (B, L, D)
    pooled_ref = emb.sum(axis=1) / lengths[:, None]      # (B, D)  (padded rows included, as in PyTorch)
    ref = jax.nn.sigmoid(pooled_ref @ lin_w + lin_b)     # (B, 1)

    assert out.shape == (B, 1)
    # Tolerance covers the EUP approx reciprocal (~2^-12 relative on the length).
    assert jnp.allclose(out, ref, atol=2e-3, rtol=1e-4), (out, ref)
    print("KERNEL_OK")
</pallas_src>

<mosaic_0001>
module attributes {stable_mosaic.version = 11 : i64} {
  func.func @embed_classifier_kernel(%arg0: i32, %arg1: memref<8x16xi32, #tpu.memory_space<vmem>>, %arg2: memref<8x1xf32, #tpu.memory_space<vmem>>, %arg3: memref<32x100xf32, #tpu.memory_space<vmem>>, %arg4: memref<100x1xf32, #tpu.memory_space<vmem>>, %arg5: memref<1x1xf32, #tpu.memory_space<smem>>, %arg6: memref<8x1xf32, #tpu.memory_space<vmem>>) attributes {dimension_semantics = [#tpu.dimension_semantics<parallel>], iteration_bounds = array<i64: 2>, scalar_prefetch = 0 : i64, scratch_operands = 0 : i64, tpu.core_type = #tpu.core_type<tc>, window_params = [{transform_indices = @transform_0, window_bounds = array<i64: 8, 16>}, {transform_indices = @transform_1, window_bounds = array<i64: 8, 1>}, {pipeline_mode = #tpu.pipeline_mode<synchronous>, transform_indices = @transform_2, window_bounds = array<i64: 32, 100>}, {pipeline_mode = #tpu.pipeline_mode<synchronous>, transform_indices = @transform_3, window_bounds = array<i64: 100, 1>}, {transform_indices = @transform_4, window_bounds = array<i64: 1, 1>}, {transform_indices = @transform_5, window_bounds = array<i64: 8, 1>}]} {
    %c0 = arith.constant 0 : index
    %c0_0 = arith.constant 0 : index
    %0 = vector.load %arg1[%c0, %c0_0] : memref<8x16xi32, #tpu.memory_space<vmem>>, vector<8x16xi32>
    %1 = tpu.iota {dimensions = array<i32: 2>} : vector<8x16x32xi32>
    %2 = vector.shape_cast %0 : vector<8x16xi32> to vector<8x16x1xi32>
    %3 = vector.broadcast %2 : vector<8x16x1xi32> to vector<8x16x32xi32>
    %4 = arith.cmpi eq, %3, %1 : vector<8x16x32xi32>
    %5 = arith.extui %4 : vector<8x16x32xi1> to vector<8x16x32xi32>
    %6 = arith.sitofp %5 : vector<8x16x32xi32> to vector<8x16x32xf32>
    %cst = arith.constant dense<0.000000e+00> : vector<8x32xf32>
    %7 = vector.multi_reduction <add>, %6, %cst [1] : vector<8x16x32xf32> to vector<8x32xf32>
    %c0_1 = arith.constant 0 : index
    %c0_2 = arith.constant 0 : index
    %8 = vector.load %arg3[%c0_1, %c0_2] : memref<32x100xf32, #tpu.memory_space<vmem>>, vector<32x100xf32>
    %c0_3 = arith.constant 0 : index
    %c0_4 = arith.constant 0 : index
    %9 = vector.load %arg4[%c0_3, %c0_4] : memref<100x1xf32, #tpu.memory_space<vmem>>, vector<100x1xf32>
    %cst_5 = arith.constant dense<0.000000e+00> : vector<32x1xf32>
    %10 = tpu.matmul %8, %9, %cst_5 {dimension_numbers = #tpu.dot_dimension_numbers<[1], [0], [0], [1], [0, 0, 1, 1], [], []>} : vector<32x100xf32>, vector<100x1xf32>, vector<32x1xf32> -> vector<32x1xf32>
    %cst_6 = arith.constant dense<0.000000e+00> : vector<8x1xf32>
    %11 = tpu.matmul %7, %10, %cst_6 {dimension_numbers = #tpu.dot_dimension_numbers<[1], [0], [0], [1], [0, 0, 1, 1], [], []>} : vector<8x32xf32>, vector<32x1xf32>, vector<8x1xf32> -> vector<8x1xf32>
    %c0_7 = arith.constant 0 : index
    %c0_8 = arith.constant 0 : index
    %12 = vector.load %arg2[%c0_7, %c0_8] : memref<8x1xf32, #tpu.memory_space<vmem>>, vector<8x1xf32>
    %13 = tpu.reciprocal %12 {approx = true} : vector<8x1xf32> -> vector<8x1xf32>
    %14 = arith.mulf %11, %13 : vector<8x1xf32>
    %c0_9 = arith.constant 0 : index
    %c0_10 = arith.constant 0 : index
    %15 = memref.load %arg5[%c0_9, %c0_10] : memref<1x1xf32, #tpu.memory_space<smem>>
    %16 = vector.broadcast %15 : f32 to vector<8x1xf32>
    %17 = arith.addf %14, %16 : vector<8x1xf32>
    %18 = arith.negf %17 : vector<8x1xf32>
    %19 = math.exp %18 : vector<8x1xf32>
    %cst_11 = arith.constant 1.000000e+00 : f32
    %20 = vector.broadcast %cst_11 : f32 to vector<8x1xf32>
    %21 = arith.addf %20, %19 : vector<8x1xf32>
    %22 = arith.divf %20, %21 : vector<8x1xf32>
    %c0_12 = arith.constant 0 : index
    %c0_13 = arith.constant 0 : index
    %23 = vector.load %arg6[%c0_12, %c0_13] : memref<8x1xf32, #tpu.memory_space<vmem>>, vector<8x1xf32>
    tpu.vector_store %arg6[%c0_12, %c0_13], %22 {strides = array<i32>} : memref<8x1xf32, #tpu.memory_space<vmem>>, vector<8x1xf32>,
    return
  }
  func.func @transform_0(%arg0: i32) -> (i32, i32) {
    %c0_i32 = arith.constant 0 : i32
    %c0_i32_0 = arith.constant 0 : i32
    return %arg0, %c0_i32 : i32, i32
  }
  func.func @transform_1(%arg0: i32) -> (i32, i32) {
    %c0_i32 = arith.constant 0 : i32
    %c0_i32_0 = arith.constant 0 : i32
    return %arg0, %c0_i32 : i32, i32
  }
  func.func @transform_2(%arg0: i32) -> (i32, i32) {
    %c0_i32 = arith.constant 0 : i32
    %c0_i32_0 = arith.constant 0 : i32
    %c0_i32_1 = arith.constant 0 : i32
    return %c0_i32, %c0_i32_0 : i32, i32
  }
  func.func @transform_3(%arg0: i32) -> (i32, i32) {
    %c0_i32 = arith.constant 0 : i32
    %c0_i32_0 = arith.constant 0 : i32
    %c0_i32_1 = arith.constant 0 : i32
    return %c0_i32, %c0_i32_0 : i32, i32
  }
  func.func @transform_4(%arg0: i32) -> (i32, i32) {
    %c0_i32 = arith.constant 0 : i32
    %c0_i32_0 = arith.constant 0 : i32
    %c0_i32_1 = arith.constant 0 : i32
    return %c0_i32, %c0_i32_0 : i32, i32
  }
  func.func @transform_5(%arg0: i32) -> (i32, i32) {
    %c0_i32 = arith.constant 0 : i32
    %c0_i32_0 = arith.constant 0 : i32
    return %arg0, %c0_i32 : i32, i32
  }
}

</mosaic_0001>

<bundles_post_ra>
// kernel: tpu_custom_call.1
= control target key start
LH: loop header
LB: loop body
LE: loop exit
PB: predicated region body
PF: predicated region fallthrough
CT: control target
= control target key end

     0   :  { %s931_s20 = smov 0   ;;  %s1077_s0 = inlined_call_operand.vmem [shape: s32[16,16], index: 0, kind: input, shape index: {}]   ;;  %s1078_s1 = inlined_call_operand.vmem [shape: f32[16,1], index: 1, kind: input, shape index: {}]   ;;  %s1079_s2 = inlined_call_operand.vmem [shape: f32[32,100], index: 2, kind: input, shape index: {}]   ;;  %s1080_s3 = inlined_call_operand.vmem [shape: f32[100,1], index: 3, kind: input, shape index: {}]   ;;  %s1081_s4 = inlined_call_operand.<no memory space> [shape: f32[1,1], index: 4, kind: input, shape index: {}]   ;;  %s1082_s5 = inlined_call_operand.vmem [shape: f32[16,1], index: 5, kind: output, shape index: {}]  }
   0x1   :  { %10 = sst [smem:[#allocation2]] %s1081_s4 }
   0x2 LB: > { %s742_s21 = sadd.s32 4294967295, %s893_s20   ;;  %p746_p0 = scmp.ge.s32.totalorder %s893_s20, 1  ;;  %s893_s20 = sphi %s931_s20, %s16_s20  }
   0x3   : > { %p196_p1 = scmp.lt.s32.totalorder %s893_s20, 3 }
   0x5   : > { %p197_p2 = pnand %p746_p0, %p196_p1 }
   0x6   : > { %v454_v0 = vld [vmem:[%s1080_s3] sm:$0xff] (!%p197_p2)  ;;  %v455_v1 = vld [vmem:[%s1080_s3 + $0x8] sm:$0xff] (!%p197_p2)  ;;  %v456_v2 = vld [vmem:[%s1080_s3 + $0x10] sm:$0xff] (!%p197_p2)  ;;  %p226_p3 = scmp.lt.s32.totalorder (!%p197_p2), %s742_s21, 1  ;;  %v239_v3 = vlaneseq (!%p197_p2)  ;;  %vm467_vm0 = vcmask (!%p197_p2), 818176   ;;  %vm480_vm1 = vcmask (!%p197_p2), 1043456  }
   0x7   : > { %200 = sbr.rel (%p197_p2) target bundleno = 500 (0x1f4), region = 40  ;;  %v840_v4 = vpack.c.bf16 (!%p197_p2), %v455_v1, %v454_v0  ;;  %v457_v5 = vld [vmem:[%s1080_s3 + $0x18] sm:$0xff] (!%p197_p2)  ;;  %v458_v7 = vld [vmem:[%s1080_s3 + $0x20] sm:$0xff] (!%p197_p2)  ;;  %v459_v8 = vld [vmem:[%s1080_s3 + $0x28] sm:$0xff] (!%p197_p2)  ;;  %v895_v42 = vmov (!%p197_p2), 0.0|0.0   ;;  %vm896_vm2 = vmmov (!%p197_p2), 0  }
   0x8   : > { %v844_v6 = vpack.c.bf16 (!%p197_p2), %v457_v5, %v456_v2  ;;  %v958_v9 = vshrl.u32 (!%p197_p2), %v239_v3, 7  ;;  %v450_v10 = vld [vmem:[%s1079_s2] sm:$0xff] (!%p197_p2)  ;;  %v848_v12 = vpack.c.bf16 (!%p197_p2), %v459_v8, %v458_v7  ;;  %v460_v14 = vld [vmem:[%s1080_s3 + $0x30] sm:$0xff] (!%p197_p2)  ;;  %v461_v15 = vld [vmem:[%s1080_s3 + $0x38] sm:$0xff] (!%p197_p2)  ;;  %864 = vmatprep.subr.bf16.mxu1 (!%p197_p2), %v895_v42  ;;  %v1013_v43 = vand.u32 (!%p197_p2), 127, %v239_v3 }
   0x9   : > { %841 = vmatprep.subr.bf16.mxu0 (!%p197_p2), %v840_v4  ;;  %823 = vmatprep.mubr.msk.f32.mxu0 (!%p197_p2), %vm467_vm0, %v450_v10  ;;  %v852_v19 = vpack.c.bf16 (!%p197_p2), %v461_v15, %v460_v14  ;;  %v462_v21 = vld [vmem:[%s1080_s3 + $0x40] sm:$0xff] (!%p197_p2)  ;;  %v463_v22 = vld [vmem:[%s1080_s3 + $0x48] sm:$0xff] (!%p197_p2)  ;;  %v464_v26 = vld [vmem:[%s1080_s3 + $0x50] sm:$0xff] (!%p197_p2)  ;;  %v897_v44 = vmov (!%p197_p2), 0.0   ;;  %vm377_vm4 = vcmask (!%p197_p2), 261120   ;;  %vm577_vm14 = vcmask (!%p197_p2), 1041409  }
   0xa   : > { %843 = vmatpush3.bf16.msra.mxu0 (!%p197_p2), %v840_v4  ;;  %v254_v11 = vsub.s32 (!%p197_p2), 1, %v958_v9  ;;  %v243_v13 = vsub.s32 (!%p197_p2), 0, %v958_v9  ;;  %v265_v20 = vsub.s32 (!%p197_p2), 2, %v958_v9  ;;  %v856_v23 = vpack.c.bf16 (!%p197_p2), %v463_v22, %v462_v21  ;;  %v465_v27 = vld [vmem:[%s1080_s3 + $0x58] sm:$0xff] (!%p197_p2)  ;;  %v466_v33 = vld [vmem:[%s1080_s3 + $0x60] sm:$0xf] (!%p197_p2)  ;;  %837 = vmatprep.mubr.msk.f32.mxu1 (!%p197_p2), %vm896_vm2, %v897_v44 }
   0xb   : > { %845 = vmatprep.subr.bf16.mxu0 (!%p197_p2), %v844_v6  ;;  %v276_v25 = vsub.s32 (!%p197_p2), 3, %v958_v9  ;;  %v860_v28 = vpack.c.bf16 (!%p197_p2), %v465_v27, %v464_v26  ;;  %v287_v30 = vsub.s32 (!%p197_p2), 4, %v958_v9  ;;  %v298_v32 = vsub.s32 (!%p197_p2), 5, %v958_v9  ;;  %v451_v36 = vld [vmem:[%s1079_s2 + $0x8] sm:$0xff] (!%p197_p2)  ;;  %v452_v37 = vld [vmem:[%s1079_s2 + $0x10] sm:$0xff] (!%p197_p2)  ;;  %v453_v40 = vld [vmem:[%s1079_s2 + $0x18] sm:$0xff] (!%p197_p2) }
   0xc   : > { %v309_v35 = vsub.s32 (!%p197_p2), 6, %v958_v9  ;;  %v320_v39 = vsub.s32 (!%p197_p2), 7, %v958_v9 }
   0xe   : > { %s1084_s21 = smov (!%p226_p3, %s742_s21), 1  ;;  %847 = vmatpush3.bf16.msra.mxu0 %v844_v6 }
   0xf   : > { %s963_s10 = sshll.u32 %s1084_s21, 3  ;;  %849 = vmatprep.subr.bf16.mxu0 %v848_v12 }
  0x10   : > { %s229_s13 = scalar_lea.vmem %s1077_s0, %s963_s10  ;;  %s233_s12 = scalar_lea.vmem %s1078_s1, %s963_s10 }
  0x11   : > { %v238_v16 = vld [vmem:[%s229_s13] sm:$0xff]  ;;  %s666_s13 = sld [smem:[#allocation2]]  ;;  %s237_s16 = scalar_lea.vmem %s1082_s5, %s963_s10 }
  0x12   : > { %v255_v17 = vrot.slane %v238_v16, %v254_v11  ;;  %v244_v18 = vrot.slane %v238_v16, %v243_v13  ;;  %851 = vmatpush3.bf16.msra.mxu0 %v848_v12  ;;  %v266_v24 = vrot.slane %v238_v16, %v265_v20  ;;  %v277_v29 = vrot.slane %v238_v16, %v276_v25 }
  0x13   : > { %853 = vmatprep.subr.bf16.mxu0 %v852_v19  ;;  %v288_v31 = vrot.slane %v238_v16, %v287_v30  ;;  %v299_v34 = vrot.slane %v238_v16, %v298_v32  ;;  %v310_v38 = vrot.slane %v238_v16, %v309_v35  ;;  %v321_v41 = vrot.slane %v238_v16, %v320_v39 }
  0x14   : > { %257 = vbcast.lane.b32.xlu1 %v255_v17, 256  ;;  %246 = vbcast.lane.b32.xlu0 %v244_v18, 256 }
  0x16   : > { %855 = vmatpush3.bf16.msra.mxu0 %v852_v19 }
  0x17   : > { %857 = vmatprep.subr.bf16.mxu0 %v856_v23 }
  0x18   : > { %261 = vbcast.lane.b32.xlu1 %v255_v17, 264  ;;  %250 = vbcast.lane.b32.xlu0 %v244_v18, 264 }
  0x1a   : > { %859 = vmatpush3.bf16.msra.mxu0 %v856_v23 }
  0x1b   : > { %861 = vmatprep.subr.bf16.mxu0 %v860_v28 }
  0x1c   : > { %272 = vbcast.lane.b32.xlu1 %v266_v24, 264  ;;  %268 = vbcast.lane.b32.xlu0 %v266_v24, 256 }
  0x1e   : > { %863 = vmatpush3.bf16.msra.mxu0 %v860_v28 }
  0x1f   : > { %821 = vmatprep.subr.msk.mxu0 %vm480_vm1, %v466_v33 }
  0x20   : > { %283 = vbcast.lane.b32.xlu1 %v277_v29, 264  ;;  %279 = vbcast.lane.b32.xlu0 %v277_v29, 256 }
  0x22   : > { %822 = vmatpush3.msk.msra.mxu0 %vm480_vm1, %v466_v33  ;;  %vm579_vm1 = vcmask 1042434  }
  0x23   : > { %824 = vmatmul.mubr.msk.f32.vlgmr.msra.gmra.mrb[0].mxu0 %vm467_vm0, %v451_v36 }
  0x24   : > { %294 = vbcast.lane.b32.xlu1 %v288_v31, 264  ;;  %290 = vbcast.lane.b32.xlu0 %v288_v31, 256 }
  0x25   : > { %826 = vmatprep.mubr.msk.f32.mxu0 %vm467_vm0, %v452_v37 }
  0x27   : > { %827 = vmatmul.mubr.msk.f32.gmra.mrb[2].mxu0 %vm467_vm0, %v453_v40 }
  0x28   : > { %305 = vbcast.lane.b32.xlu1 %v299_v34, 264  ;;  %301 = vbcast.lane.b32.xlu0 %v299_v34, 256 }
  0x2c   : > { %316 = vbcast.lane.b32.xlu1 %v310_v38, 264  ;;  %312 = vbcast.lane.b32.xlu0 %v310_v38, 256 }
  0x30   : > { %327 = vbcast.lane.b32.xlu1 %v321_v41, 264  ;;  %323 = vbcast.lane.b32.xlu0 %v321_v41, 256 }
  0x86   : > { %v258_v45 = vpop.permute.xlu1 %257  ;;  %v247_v46 = vpop.permute.xlu0 %246 }
  0x87   : > { %vm331_vm3 = vcmp.eq.s32.totalorder %v258_v45, %v1013_v43  ;;  %vm329_vm5 = vcmp.eq.s32.totalorder %v247_v46, %v1013_v43 }
  0x88   : > { %v752_v47 = vsel %vm331_vm3, 1.0, %v897_v44  ;;  %v750_v48 = vsel %vm329_vm5, 1.0, %v897_v44  ;;  %vm581_vm5 = vcmask 1043459  }
  0x89   : > { %v387_v50 = vsel %vm377_vm4, %v752_v47, 0.0  ;;  %v378_v52 = vsel %vm377_vm4, %v750_v48, 0.0 }
  0x8a   : > { %v262_v49 = vpop.permute.xlu1 %261  ;;  %v251_v51 = vpop.permute.xlu0 %250 }
  0x8b   : > { %vm332_vm6 = vcmp.eq.s32.totalorder %v262_v49, %v1013_v43  ;;  %vm330_vm7 = vcmp.eq.s32.totalorder %v251_v51, %v1013_v43 }
  0x8c   : > { %v753_v53 = vsel %vm332_vm6, 1.0, %v897_v44  ;;  %v751_v55 = vsel %vm330_vm7, 1.0, %v897_v44 }
  0x8d   : > { %v388_v54 = vsel %vm377_vm4, %v753_v53, 0.0  ;;  %v379_v57 = vsel %vm377_vm4, %v751_v55, 0.0 }
  0x8e   : > { %v389_v56 = vadd.f32 %v388_v54, %v387_v50  ;;  %v273_v58 = vpop.permute.xlu1 %272  ;;  %v380_v59 = vadd.f32 %v379_v57, %v378_v52  ;;  %v269_v60 = vpop.permute.xlu0 %268 }
  0x8f   : > { %vm334_vm8 = vcmp.eq.s32.totalorder %v273_v58, %v1013_v43  ;;  %vm333_vm9 = vcmp.eq.s32.totalorder %v269_v60, %v1013_v43 }
  0x90   : > { %v390_v61 = vrot.slane %v389_v56, 4  ;;  %v755_v62 = vsel %vm334_vm8, 1.0, %v897_v44  ;;  %v381_v63 = vrot.slane %v380_v59, 4  ;;  %v754_v1 = vsel %vm333_vm9, 1.0, %v897_v44 }
  0x91   : > { %v397_v0 = vsel %vm377_vm4, %v755_v62, 0.0  ;;  %v396_v3 = vsel %vm377_vm4, %v754_v1, 0.0  ;;  %vm583_vm8 = vcmask 1044484   ;;  %vm585_vm9 = vcmask 1045509  }
  0x92   : > { %v391_v2 = vadd.f32 %v390_v61, %v389_v56  ;;  %v284_v4 = vpop.permute.xlu1 %283  ;;  %v382_v5 = vadd.f32 %v381_v63, %v380_v59  ;;  %v398_v6 = vadd.f32 %v397_v0, %v396_v3  ;;  %v280_v7 = vpop.permute.xlu0 %279 }
  0x93   : > { %vm336_vm10 = vcmp.eq.s32.totalorder %v284_v4, %v1013_v43  ;;  %vm335_vm11 = vcmp.eq.s32.totalorder %v280_v7, %v1013_v43 }
  0x94   : > { %v392_v8 = vrot.slane %v391_v2, 2  ;;  %v757_v9 = vsel %vm336_vm10, 1.0, %v897_v44  ;;  %v383_v10 = vrot.slane %v382_v5, 2  ;;  %v399_v11 = vrot.slane %v398_v6, 4 }
  0x95   : > { %v406_v12 = vsel %vm377_vm4, %v757_v9, 0.0  ;;  %v756_v13 = vsel %vm335_vm11, 1.0, %v897_v44  ;;  %vm587_vm10 = vcmask 1046534   ;;  %vm589_vm11 = vcmask 1047559  }
  0x96   : > { %v393_v14 = vadd.f32 %v392_v8, %v391_v2  ;;  %v405_v15 = vsel %vm377_vm4, %v756_v13, 0.0  ;;  %v295_v16 = vpop.permute.xlu1 %294  ;;  %v384_v17 = vadd.f32 %v383_v10, %v382_v5  ;;  %v400_v18 = vadd.f32 %v399_v11, %v398_v6  ;;  %v291_v20 = vpop.permute.xlu0 %290 }
  0x97   : > { %v407_v19 = vadd.f32 %v406_v12, %v405_v15  ;;  %vm338_vm12 = vcmp.eq.s32.totalorder %v295_v16, %v1013_v43  ;;  %vm337_vm13 = vcmp.eq.s32.totalorder %v291_v20, %v1013_v43 }
  0x98   : > { %v394_v21 = vrot.slane %v393_v14, 1  ;;  %v759_v22 = vsel %vm338_vm12, 1.0, %v897_v44  ;;  %v385_v23 = vrot.slane %v384_v17, 1  ;;  %v401_v24 = vrot.slane %v400_v18, 2 }
  0x99   : > { %v408_v25 = vrot.slane %v407_v19, 4  ;;  %v415_v26 = vsel %vm377_vm4, %v759_v22, 0.0  ;;  %v758_v28 = vsel %vm337_vm13, 1.0, %v897_v44 }
  0x9a   : > { %v395_v27 = vadd.f32 %v394_v21, %v393_v14  ;;  %v306_v29 = vpop.permute.xlu1 %305  ;;  %v386_v30 = vadd.f32 %v385_v23, %v384_v17  ;;  %v402_v31 = vadd.f32 %v401_v24, %v400_v18  ;;  %v414_v33 = vsel %vm377_vm4, %v758_v28, 0.0  ;;  %v302_v34 = vpop.permute.xlu0 %301 }
  0x9b   : > { %v409_v32 = vadd.f32 %v408_v25, %v407_v19  ;;  %v416_v35 = vadd.f32 %v415_v26, %v414_v33  ;;  %vm340_vm15 = vcmp.eq.s32.totalorder %v306_v29, %v1013_v43  ;;  %vm339_vm0 = vcmp.eq.s32.totalorder %v302_v34, %v1013_v43 }
  0x9c   : > { %v578_v36 = vsel %vm577_vm14, %v395_v27, %v386_v30  ;;  %v403_v37 = vrot.slane %v402_v31, 1  ;;  %v761_v39 = vsel %vm340_vm15, 1.0, %v897_v44  ;;  %v760_v45 = vsel %vm339_vm0, 1.0, %v897_v44 }
  0x9d   : > { %v410_v38 = vrot.slane %v409_v32, 2  ;;  %v417_v40 = vrot.slane %v416_v35, 4  ;;  %v424_v41 = vsel %vm377_vm4, %v761_v39, 0.0  ;;  %v423_v49 = vsel %vm377_vm4, %v760_v45, 0.0 }
  0x9e   : > { %v317_v46 = vpop.permute.xlu1 %316  ;;  %v404_v47 = vadd.f32 %v403_v37, %v402_v31  ;;  %v313_v50 = vpop.permute.xlu0 %312  ;;  %v425_v52 = vadd.f32 %v424_v41, %v423_v49 }
  0x9f   : > { %v411_v48 = vadd.f32 %v410_v38, %v409_v32  ;;  %vm342_vm2 = vcmp.eq.s32.totalorder %v317_v46, %v1013_v43  ;;  %v418_v51 = vadd.f32 %v417_v40, %v416_v35  ;;  %vm341_vm3 = vcmp.eq.s32.totalorder %v313_v50, %v1013_v43  ;;  %v663_v35 = vld [vmem:[%s233_s12] sm:$0xff] }
  0xa0   : > { %v763_v53 = vsel %vm342_vm2, 1.0, %v897_v44  ;;  %v580_v54 = vsel %vm579_vm1, %v404_v47, %v578_v36  ;;  %v762_v57 = vsel %vm341_vm3, 1.0, %v897_v44  ;;  %v426_v59 = vrot.slane %v425_v52, 4 }
  0xa1   : > { %v412_v55 = vrot.slane %v411_v48, 1  ;;  %v433_v56 = vsel %vm377_vm4, %v763_v53, 0.0  ;;  %v419_v58 = vrot.slane %v418_v51, 2  ;;  %v432_v60 = vsel %vm377_vm4, %v762_v57, 0.0 }
  0xa2   : > { %v328_v61 = vpop.permute.xlu1 %327  ;;  %v434_v63 = vadd.f32 %v433_v56, %v432_v60  ;;  %v324_v0 = vpop.permute.xlu0 %323  ;;  %v427_v2 = vadd.f32 %v426_v59, %v425_v52  ;;  %881 = vrcp.f32 %v663_v35  ;;  %v667_v38 = vstv %s666_s13 }
  0xa3   : > { %v413_v62 = vadd.f32 %v412_v55, %v411_v48  ;;  %vm344_vm6 = vcmp.eq.s32.totalorder %v328_v61, %v1013_v43  ;;  %v420_v1 = vadd.f32 %v419_v58, %v418_v51  ;;  %vm343_vm7 = vcmp.eq.s32.totalorder %v324_v0, %v1013_v43 }
  0xa4   : > { %v765_v3 = vsel %vm344_vm6, 1.0, %v897_v44  ;;  %v435_v4 = vrot.slane %v434_v63, 4  ;;  %v764_v6 = vsel %vm343_vm7, 1.0, %v897_v44  ;;  %v428_v9 = vrot.slane %v427_v2, 2 }
  0xa5   : > { %v442_v5 = vsel %vm377_vm4, %v765_v3, 0.0  ;;  %v582_v7 = vsel %vm581_vm5, %v413_v62, %v580_v54  ;;  %v421_v8 = vrot.slane %v420_v1, 1  ;;  %v441_v10 = vsel %vm377_vm4, %v764_v6, 0.0 }
  0xa6   : > { %v436_v11 = vadd.f32 %v435_v4, %v434_v63  ;;  %v443_v12 = vadd.f32 %v442_v5, %v441_v10  ;;  %v429_v14 = vadd.f32 %v428_v9, %v427_v2 }
  0xa7   : > { %v422_v13 = vadd.f32 %v421_v8, %v420_v1 }
  0xa8   : > { %v437_v15 = vrot.slane %v436_v11, 2  ;;  %v444_v16 = vrot.slane %v443_v12, 4  ;;  %v430_v17 = vrot.slane %v429_v14, 1 }
  0xa9   : > { %v584_v18 = vsel %vm583_vm8, %v422_v13, %v582_v7 }
  0xaa   : > { %v438_v43 = vadd.f32 %v437_v15, %v436_v11  ;;  %v445_v19 = vadd.f32 %v444_v16, %v443_v12  ;;  %v431_v20 = vadd.f32 %v430_v17, %v429_v14 }
  0xac   : > { %v439_v21 = vrot.slane %v438_v43, 1  ;;  %v446_v44 = vrot.slane %v445_v19, 2  ;;  %v586_v22 = vsel %vm585_vm9, %v431_v20, %v584_v18  ;;  %v882_v36 = vpop.eup %881 }
  0xae   : > { %v440_v23 = vadd.f32 %v439_v21, %v438_v43  ;;  %v447_v24 = vadd.f32 %v446_v44, %v445_v19 }
  0xb0   : > { %v448_v25 = vrot.slane %v447_v24, 1  ;;  %v588_v26 = vsel %vm587_vm10, %v440_v23, %v586_v22 }
  0xb2   : > { %v449_v27 = vadd.f32 %v448_v25, %v447_v24 }
  0xb4   : > { %v590_v28 = vsel %vm589_vm11, %v449_v27, %v588_v26 }
  0xf6   : > { %v825_v29 = vpop.f32.mrb[0].mxu0 }
  0xf7   : > { %v550_v30 = vpop.f32.mrb[1].mxu0 }
  0xf8   : > { %v865_v31 = vpack.c.bf16 %v825_v29, %v550_v30 }
  0xfa   : > { %v828_v32 = vpop.f32.mrb[2].mxu0  ;;  %866 = vmatpush3.bf16.msra.mxu1 %v865_v31 }
  0xfb   : > { %v560_v33 = vpop.f32.mrb[3].mxu0  ;;  %867 = vmatprep.subr.bf16.mxu1 %v895_v42 }
  0xfc   : > { %v868_v34 = vpack.c.bf16 %v828_v32, %v560_v33 }
  0xfe   : > { %869 = vmatpush3.bf16.msra.mxu1 %v868_v34 }
 0x101   : > { %838 = vmatmul.mubr.msk.f32.vlgmr.msra.gmra.mrb[0].mxu1 %vm377_vm4, %v590_v28  ;;  %vm675_vm4 = vcmask 7168  }
 0x1d4   : > { %v659_v37 = vpop.f32.mrb[0].mxu1 }
 0x1d5   : > { %v665_v39 = vmul.f32 %v882_v36, %v659_v37  ;;  %v839_v40 = vpop.f32.mrb[1].mxu1 }
 0x1d7   : > { %v668_v41 = vadd.f32 %v667_v38, %v665_v39 }
 0x1d9   : > { %v772_v45 = vmul.f32 -1.442695, %v668_v41 }
 0x1db   : > { %883 = vpow2.f32 %v772_v45 }
 0x1e5   : > { %v884_v42 = vpop.eup %883 }
 0x1e6   : > { %v672_v46 = vadd.f32 1.0, %v884_v42 }
 0x1e8   : > { %885 = vrcp.f32 %v672_v46 }
 0x1f2   : > { %v886_v47 = vpop.eup %885 }
 0x1f3   : > { %676 = vst.msk [vmem:[%s237_s16] sm:$0xff] %vm675_vm4, %v886_v47 }
 0x1f4 PF: > { %s16_s20 = sadd.s32 1, %s893_s20  }
 0x1f5   : > { %p13_p4 = scmp.ge.s32.totalorder %s16_s20, 4  }
 0x1f7   :  { %15 = sbr.rel (!%p13_p4) target bundleno = 2 (0x2), region = 73 }

</bundles_post_ra>
